<compile_context>
chip_gen: v6e
topology: v6e:2x2x1
jax: 0.10.0
libtpu: 0.0.40
codegen_flags: <defaults>
</compile_context>

<pallas_src>
import functools

import jax
import jax.numpy as jnp
from jax.experimental import pallas as pl
from jax.experimental.pallas import tpu as pltpu

_NEG_BIG = -1e30  # finite "-inf" (avoids inf-inf NaNs on padded tiles)


def _ce_kernel(x_ref, out_ref, m_sc, l_sc, d_sc, *,
               K, B, N, TM, TN, NI, NJ, row_mask, col_mask):
    """Accumulates sum_k sum_i (logsumexp(x_k[i,:]) - x_k[i,i]) / (K*B).

    Grid = (K entries, row blocks, col blocks); col axis is the reduction.
    x_ref : VMEM [TM, TN] tile of entry k
    out_ref: SMEM [1, 1] f32, resident across the whole grid (accumulator)
    m_sc, l_sc, d_sc: VMEM [TM, 1] f32 running max / sum / diag scratch
    """
    k = pl.program_id(0)
    i = pl.program_id(1)
    j = pl.program_id(2)

    # Zero the global accumulator on the very first grid step.
    @pl.when((k == 0) & (i == 0) & (j == 0))
    def _():
        out_ref[0, 0] = jnp.float32(0.0)

    # Reset per-row online-softmax state at the start of each row stripe.
    @pl.when(j == 0)
    def _():
        m_sc[...] = jnp.full_like(m_sc, _NEG_BIG)
        l_sc[...] = jnp.zeros_like(l_sc)
        d_sc[...] = jnp.zeros_like(d_sc)

    x = x_ref[...].astype(jnp.float32)          # [TM, TN]
    row_off = i * TM
    col_off = j * TN

    rows = jax.lax.broadcasted_iota(jnp.int32, (TM, 1), 0) + row_off  # [TM,1]
    if col_mask:  # static: only if N % TN != 0
        cols = jax.lax.broadcasted_iota(jnp.int32, (TM, TN), 1) + col_off
        x = jnp.where(cols < N, x, _NEG_BIG)
    if row_mask:  # static: only if B % TM != 0
        x = jnp.where(rows < B, x, 0.0)

    # Online logsumexp over the class (column) axis.
    m_new = jnp.maximum(m_sc[...], jnp.max(x, axis=-1, keepdims=True))
    alpha = jnp.exp(m_sc[...] - m_new)
    l_sc[...] = alpha * l_sc[...] + jnp.sum(jnp.exp(x - m_new),
                                            axis=-1, keepdims=True)
    m_sc[...] = m_new

    # Target logit (labels = arange(B) -> element (r, r)): only column blocks
    # intersecting the diagonal of this row stripe do any work.
    @pl.when((row_off < col_off + TN) & (col_off < row_off + TM))
    def _():
        rr = jax.lax.broadcasted_iota(jnp.int32, (TM, TN), 0) + row_off
        cc = jax.lax.broadcasted_iota(jnp.int32, (TM, TN), 1) + col_off
        d_sc[...] += jnp.sum(jnp.where(rr == cc, x, 0.0),
                             axis=-1, keepdims=True)

    # Finish the row stripe: accumulate sum_i (lse_i - x[i, i]).
    @pl.when(j == NJ - 1)
    def _():
        lse = m_sc[...] + jnp.log(l_sc[...])     # [TM, 1]
        contrib = lse - d_sc[...]
        if row_mask:
            contrib = jnp.where(rows < B, contrib, 0.0)
        out_ref[0, 0] += jnp.sum(contrib)

    # Final grid step: sum -> mean over (K entries) x (B rows).
    @pl.when((k == K - 1) & (i == NI - 1) & (j == NJ - 1))
    def _():
        out_ref[0, 0] = out_ref[0, 0] * jnp.float32(1.0 / (K * B))


def _choose_tiles(B, N):
    """Row/col tile sizes respecting the (8,128) rule: a tile dim is either the
    full array dim or a multiple of 8 / 128."""
    MAX_TM, MAX_TN = 256, 2048
    TM = B if B <= MAX_TM else MAX_TM     # 256 % 8 == 0
    TN = N if N <= MAX_TN else MAX_TN     # 2048 % 128 == 0
    return TM, TN


def _ce_mean_over_entries(stacked):
    """Mean over (entries x rows) of CE(logits_k, arange(B)).  stacked: [K,B,N]."""
    K, B, N = stacked.shape
    assert B <= N, "labels = arange(B) requires B <= num_classes"

    TM, TN = _choose_tiles(B, N)
    NI = pl.cdiv(B, TM)
    NJ = pl.cdiv(N, TN)
    row_mask = (B % TM) != 0
    col_mask = (N % TN) != 0

    kernel = functools.partial(
        _ce_kernel, K=K, B=B, N=N, TM=TM, TN=TN, NI=NI, NJ=NJ,
        row_mask=row_mask, col_mask=col_mask)

    # Double-buffered input tile + scratch + headroom (keeps well under the
    # 64 MiB per-TC VMEM of v7x and default scoped limits of v5e/v6e).
    tile_bytes = TM * TN * stacked.dtype.itemsize
    vmem_limit = int(min(96 * 1024 * 1024,
                         max(16 * 1024 * 1024, 4 * tile_bytes + (2 << 20))))

    out = pl.pallas_call(
        kernel,
        out_shape=jax.ShapeDtypeStruct((1, 1), jnp.float32),
        grid_spec=pltpu.PrefetchScalarGridSpec(
            num_scalar_prefetch=0,
            grid=(K, NI, NJ),
            in_specs=[pl.BlockSpec((None, TM, TN), lambda k, i, j: (k, i, j))],
            out_specs=pl.BlockSpec((1, 1), lambda k, i, j: (0, 0),
                                   memory_space=pltpu.SMEM),
            scratch_shapes=[pltpu.VMEM((TM, 1), jnp.float32)] * 3,
        ),
        compiler_params=pltpu.CompilerParams(
            # Every grid axis feeds the single resident accumulator block.
            dimension_semantics=("arbitrary", "arbitrary", "arbitrary"),
            vmem_limit_bytes=vmem_limit,
        ),
    )(stacked)
    return out[0, 0]


def clip_loss(logits_dict):
    """Mirrors mobclip.loss.Loss.forward: labels = arange(batch), CE per valid
    entry, averaged over the number of valid entries; 0.0 if none are valid."""
    vals = [jnp.asarray(v) for v in logits_dict.values() if v is not None]
    if not vals:
        return jnp.float32(0.0)
    if len({v.shape for v in vals}) == 1:
        # Common case (CLIP): all entries share [B, N] -> one fused kernel call.
        stacked = jnp.stack(vals, axis=0)
        return _ce_mean_over_entries(stacked)
    # Fallback: differing class dims -> one call per entry, averaged.
    total = jnp.float32(0.0)
    for v in vals:
        total = total + _ce_mean_over_entries(v[None])
    return total / len(vals)


def _reference_clip_loss(logits_dict):
    """Pure-JAX reference for correctness check."""
    total = 0.0
    valid = 0
    for _key, value in logits_dict.items():
        if value is not None:
            x = jnp.asarray(value).astype(jnp.float32)
            b = x.shape[0]
            logp = jax.nn.log_softmax(x, axis=-1)
            total = total + jnp.mean(-logp[jnp.arange(b), jnp.arange(b)])
            valid += 1
    return total / valid if valid > 0 else jnp.float32(0.0)


if __name__ == "__main__":
    key = jax.random.PRNGKey(0)
    k1, k2, k3, k4 = jax.random.split(key, 4)

    # CLIP-style square logits: [batch, batch]
    B = 8
    logits = {
        "image_text": jax.random.normal(k1, (B, B), dtype=jnp.float32) * 3.0,
        "image_loc": jax.random.normal(k2, (B, B), dtype=jnp.float32) * 3.0,
        "missing_modality": None,
        "text_loc": jax.random.normal(k3, (B, B), dtype=jnp.float32) * 3.0,
    }
    loss = clip_loss(logits)
    jax.block_until_ready(loss)
    ref = _reference_clip_loss(logits)
    assert jnp.allclose(loss, ref, atol=1e-4, rtol=1e-4), (loss, ref)

    # Rectangular (B < N) single-entry case, bf16 input kept in native dtype.
    logits2 = {
        "only": (jax.random.normal(k4, (8, 16), dtype=jnp.float32) * 2.0
                 ).astype(jnp.bfloat16),
        "none": None,
    }
    loss2 = clip_loss(logits2)
    jax.block_until_ready(loss2)
    ref2 = _reference_clip_loss(logits2)
    assert jnp.allclose(loss2, ref2, atol=2e-2, rtol=2e-2), (loss2, ref2)

    print("KERNEL_OK")
</pallas_src>

<mosaic_0001>
module attributes {stable_mosaic.version = 11 : i64} {
  func.func @_ce_kernel(%arg0: i32, %arg1: i32, %arg2: i32, %arg3: memref<1x8x8xf32, #tpu.memory_space<vmem>>, %arg4: memref<1x1xf32, #tpu.memory_space<smem>>, %arg5: memref<8x1xf32, #tpu.memory_space<vmem>>, %arg6: memref<8x1xf32, #tpu.memory_space<vmem>>, %arg7: memref<8x1xf32, #tpu.memory_space<vmem>>) attributes {dimension_semantics = [#tpu.dimension_semantics<arbitrary>, #tpu.dimension_semantics<arbitrary>, #tpu.dimension_semantics<arbitrary>], iteration_bounds = array<i64: 3, 1, 1>, scalar_prefetch = 0 : i64, scratch_operands = 3 : i64, tpu.core_type = #tpu.core_type<tc>, window_params = [{transform_indices = @transform_0, window_bounds = array<i64: 1, 8, 8>}, {transform_indices = @transform_1, window_bounds = array<i64: 1, 1>}]} {
    %c0_i32 = arith.constant 0 : i32
    %0 = arith.cmpi eq, %arg0, %c0_i32 : i32
    %c0_i32_0 = arith.constant 0 : i32
    %1 = arith.cmpi eq, %arg1, %c0_i32_0 : i32
    %2 = arith.andi %0, %1 : i1
    %c0_i32_1 = arith.constant 0 : i32
    %3 = arith.cmpi eq, %arg2, %c0_i32_1 : i32
    %4 = arith.andi %2, %3 : i1
    %5 = arith.extui %4 : i1 to i32
    %c0_i32_2 = arith.constant 0 : i32
    %6 = arith.cmpi ne, %5, %c0_i32_2 : i32
    scf.if %6 {
      %cst_27 = arith.constant 0.000000e+00 : f32
      %c0_28 = arith.constant 0 : index
      %c0_29 = arith.constant 0 : index
      %48 = memref.load %arg4[%c0_28, %c0_29] : memref<1x1xf32, #tpu.memory_space<smem>>
      memref.store %cst_27, %arg4[%c0_28, %c0_29] : memref<1x1xf32, #tpu.memory_space<smem>>
    } else {
    }
    %c0_i32_3 = arith.constant 0 : i32
    %7 = arith.cmpi eq, %arg2, %c0_i32_3 : i32
    %8 = arith.extui %7 : i1 to i32
    %c0_i32_4 = arith.constant 0 : i32
    %9 = arith.cmpi ne, %8, %c0_i32_4 : i32
    scf.if %9 {
      %cst_27 = arith.constant -1.000000e+30 : f32
      %48 = vector.broadcast %cst_27 : f32 to vector<8x1xf32>
      %c0_28 = arith.constant 0 : index
      %c0_29 = arith.constant 0 : index
      %49 = vector.load %arg5[%c0_28, %c0_29] : memref<8x1xf32, #tpu.memory_space<vmem>>, vector<8x1xf32>
      tpu.vector_store %arg5[%c0_28, %c0_29], %48 {strides = array<i32>} : memref<8x1xf32, #tpu.memory_space<vmem>>, vector<8x1xf32>,
      %cst_30 = arith.constant 0.000000e+00 : f32
      %50 = vector.broadcast %cst_30 : f32 to vector<8x1xf32>
      %c0_31 = arith.constant 0 : index
      %c0_32 = arith.constant 0 : index
      %51 = vector.load %arg6[%c0_31, %c0_32] : memref<8x1xf32, #tpu.memory_space<vmem>>, vector<8x1xf32>
      tpu.vector_store %arg6[%c0_31, %c0_32], %50 {strides = array<i32>} : memref<8x1xf32, #tpu.memory_space<vmem>>, vector<8x1xf32>,
      %cst_33 = arith.constant 0.000000e+00 : f32
      %52 = vector.broadcast %cst_33 : f32 to vector<8x1xf32>
      %c0_34 = arith.constant 0 : index
      %c0_35 = arith.constant 0 : index
      %53 = vector.load %arg7[%c0_34, %c0_35] : memref<8x1xf32, #tpu.memory_space<vmem>>, vector<8x1xf32>
      tpu.vector_store %arg7[%c0_34, %c0_35], %52 {strides = array<i32>} : memref<8x1xf32, #tpu.memory_space<vmem>>, vector<8x1xf32>,
    } else {
    }
    %c0 = arith.constant 0 : index
    %c0_5 = arith.constant 0 : index
    %c0_6 = arith.constant 0 : index
    %10 = vector.load %arg3[%c0, %c0_5, %c0_6] : memref<1x8x8xf32, #tpu.memory_space<vmem>>, vector<1x8x8xf32>
    %11 = vector.shape_cast %10 : vector<1x8x8xf32> to vector<8x8xf32>
    %c8_i32 = arith.constant 8 : i32
    %12 = arith.muli %arg1, %c8_i32 : i32
    %c8_i32_7 = arith.constant 8 : i32
    %13 = arith.muli %arg2, %c8_i32_7 : i32
    %c0_8 = arith.constant 0 : index
    %c0_9 = arith.constant 0 : index
    %14 = vector.load %arg5[%c0_8, %c0_9] : memref<8x1xf32, #tpu.memory_space<vmem>>, vector<8x1xf32>
    %cst = arith.constant dense<0xFF800000> : vector<8xf32>
    %15 = vector.multi_reduction <maximumf>, %11, %cst [1] : vector<8x8xf32> to vector<8xf32>
    %16 = vector.shape_cast %15 : vector<8xf32> to vector<8x1xf32>
    %17 = arith.maximumf %14, %16 : vector<8x1xf32>
    %c0_10 = arith.constant 0 : index
    %c0_11 = arith.constant 0 : index
    %18 = vector.load %arg5[%c0_10, %c0_11] : memref<8x1xf32, #tpu.memory_space<vmem>>, vector<8x1xf32>
    %19 = arith.subf %18, %17 : vector<8x1xf32>
    %20 = math.exp %19 : vector<8x1xf32>
    %c0_12 = arith.constant 0 : index
    %c0_13 = arith.constant 0 : index
    %21 = vector.load %arg6[%c0_12, %c0_13] : memref<8x1xf32, #tpu.memory_space<vmem>>, vector<8x1xf32>
    %22 = arith.mulf %20, %21 : vector<8x1xf32>
    %23 = vector.broadcast %17 : vector<8x1xf32> to vector<8x8xf32>
    %24 = arith.subf %11, %23 : vector<8x8xf32>
    %25 = math.exp %24 : vector<8x8xf32>
    %cst_14 = arith.constant dense<0.000000e+00> : vector<8xf32>
    %26 = vector.multi_reduction <add>, %25, %cst_14 [1] : vector<8x8xf32> to vector<8xf32>
    %27 = vector.shape_cast %26 : vector<8xf32> to vector<8x1xf32>
    %28 = arith.addf %22, %27 : vector<8x1xf32>
    %c0_15 = arith.constant 0 : index
    %c0_16 = arith.constant 0 : index
    %29 = vector.load %arg6[%c0_15, %c0_16] : memref<8x1xf32, #tpu.memory_space<vmem>>, vector<8x1xf32>
    tpu.vector_store %arg6[%c0_15, %c0_16], %28 {strides = array<i32>} : memref<8x1xf32, #tpu.memory_space<vmem>>, vector<8x1xf32>,
    %c0_17 = arith.constant 0 : index
    %c0_18 = arith.constant 0 : index
    %30 = vector.load %arg5[%c0_17, %c0_18] : memref<8x1xf32, #tpu.memory_space<vmem>>, vector<8x1xf32>
    tpu.vector_store %arg5[%c0_17, %c0_18], %17 {strides = array<i32>} : memref<8x1xf32, #tpu.memory_space<vmem>>, vector<8x1xf32>,
    %c8_i32_19 = arith.constant 8 : i32
    %31 = arith.addi %13, %c8_i32_19 : i32
    %32 = arith.cmpi slt, %12, %31 : i32
    %c8_i32_20 = arith.constant 8 : i32
    %33 = arith.addi %12, %c8_i32_20 : i32
    %34 = arith.cmpi slt, %13, %33 : i32
    %35 = arith.andi %32, %34 : i1
    %36 = arith.extui %35 : i1 to i32
    %c0_i32_21 = arith.constant 0 : i32
    %37 = arith.cmpi ne, %36, %c0_i32_21 : i32
    scf.if %37 {
      %48 = tpu.iota {dimensions = array<i32: 0>} : vector<8x8xi32>
      %49 = vector.broadcast %12 : i32 to vector<8x8xi32>
      %50 = arith.addi %48, %49 : vector<8x8xi32>
      %51 = tpu.iota {dimensions = array<i32: 1>} : vector<8x8xi32>
      %52 = vector.broadcast %13 : i32 to vector<8x8xi32>
      %53 = arith.addi %51, %52 : vector<8x8xi32>
      %c0_27 = arith.constant 0 : index
      %c0_28 = arith.constant 0 : index
      %54 = vector.load %arg7[%c0_27, %c0_28] : memref<8x1xf32, #tpu.memory_space<vmem>>, vector<8x1xf32>
      %55 = arith.cmpi eq, %50, %53 : vector<8x8xi32>
      %cst_29 = arith.constant 0.000000e+00 : f32
      %56 = vector.broadcast %cst_29 : f32 to vector<8x8xf32>
      %57 = arith.select %55, %11, %56 : vector<8x8xi1>, vector<8x8xf32>
      %cst_30 = arith.constant dense<0.000000e+00> : vector<8xf32>
      %58 = vector.multi_reduction <add>, %57, %cst_30 [1] : vector<8x8xf32> to vector<8xf32>
      %59 = vector.shape_cast %58 : vector<8xf32> to vector<8x1xf32>
      %60 = arith.addf %54, %59 : vector<8x1xf32>
      %c0_31 = arith.constant 0 : index
      %c0_32 = arith.constant 0 : index
      %61 = vector.load %arg7[%c0_31, %c0_32] : memref<8x1xf32, #tpu.memory_space<vmem>>, vector<8x1xf32>
      tpu.vector_store %arg7[%c0_31, %c0_32], %60 {strides = array<i32>} : memref<8x1xf32, #tpu.memory_space<vmem>>, vector<8x1xf32>,
    } else {
    }
    %c0_i32_22 = arith.constant 0 : i32
    %38 = arith.cmpi eq, %arg2, %c0_i32_22 : i32
    %39 = arith.extui %38 : i1 to i32
    %c0_i32_23 = arith.constant 0 : i32
    %40 = arith.cmpi ne, %39, %c0_i32_23 : i32
    scf.if %40 {
      %c0_27 = arith.constant 0 : index
      %c0_28 = arith.constant 0 : index
      %48 = vector.load %arg5[%c0_27, %c0_28] : memref<8x1xf32, #tpu.memory_space<vmem>>, vector<8x1xf32>
      %c0_29 = arith.constant 0 : index
      %c0_30 = arith.constant 0 : index
      %49 = vector.load %arg6[%c0_29, %c0_30] : memref<8x1xf32, #tpu.memory_space<vmem>>, vector<8x1xf32>
      %50 = math.log %49 : vector<8x1xf32>
      %51 = arith.addf %48, %50 : vector<8x1xf32>
      %c0_31 = arith.constant 0 : index
      %c0_32 = arith.constant 0 : index
      %52 = vector.load %arg7[%c0_31, %c0_32] : memref<8x1xf32, #tpu.memory_space<vmem>>, vector<8x1xf32>
      %53 = arith.subf %51, %52 : vector<8x1xf32>
      %c0_33 = arith.constant 0 : index
      %c0_34 = arith.constant 0 : index
      %54 = memref.load %arg4[%c0_33, %c0_34] : memref<1x1xf32, #tpu.memory_space<smem>>
      %55 = vector.shape_cast %53 : vector<8x1xf32> to vector<1x8x1xf32>
      %cst_35 = arith.constant dense<0.000000e+00> : vector<1xf32>
      %56 = vector.multi_reduction <add>, %55, %cst_35 [1, 2] : vector<1x8x1xf32> to vector<1xf32>
      %57 = vector.shape_cast %56 : vector<1xf32> to vector<1x1x1xf32>
      %58 = vector.extract %57[0, 0, 0] : f32 from vector<1x1x1xf32>
      %59 = arith.addf %54, %58 : f32
      %c0_36 = arith.constant 0 : index
      %c0_37 = arith.constant 0 : index
      %60 = memref.load %arg4[%c0_36, %c0_37] : memref<1x1xf32, #tpu.memory_space<smem>>
      memref.store %59, %arg4[%c0_36, %c0_37] : memref<1x1xf32, #tpu.memory_space<smem>>
    } else {
    }
    %c2_i32 = arith.constant 2 : i32
    %41 = arith.cmpi eq, %arg0, %c2_i32 : i32
    %c0_i32_24 = arith.constant 0 : i32
    %42 = arith.cmpi eq, %arg1, %c0_i32_24 : i32
    %43 = arith.andi %41, %42 : i1
    %c0_i32_25 = arith.constant 0 : i32
    %44 = arith.cmpi eq, %arg2, %c0_i32_25 : i32
    %45 = arith.andi %43, %44 : i1
    %46 = arith.extui %45 : i1 to i32
    %c0_i32_26 = arith.constant 0 : i32
    %47 = arith.cmpi ne, %46, %c0_i32_26 : i32
    scf.if %47 {
      %c0_27 = arith.constant 0 : index
      %c0_28 = arith.constant 0 : index
      %48 = memref.load %arg4[%c0_27, %c0_28] : memref<1x1xf32, #tpu.memory_space<smem>>
      %cst_29 = arith.constant 0.0416666679 : f32
      %49 = arith.mulf %48, %cst_29 : f32
      %c0_30 = arith.constant 0 : index
      %c0_31 = arith.constant 0 : index
      %50 = memref.load %arg4[%c0_30, %c0_31] : memref<1x1xf32, #tpu.memory_space<smem>>
      memref.store %49, %arg4[%c0_30, %c0_31] : memref<1x1xf32, #tpu.memory_space<smem>>
    } else {
    }
    return
  }
  func.func @transform_0(%arg0: i32, %arg1: i32, %arg2: i32) -> (i32, i32, i32) {
    %c0_i32 = arith.constant 0 : i32
    return %arg0, %arg1, %arg2 : i32, i32, i32
  }
  func.func @transform_1(%arg0: i32, %arg1: i32, %arg2: i32) -> (i32, i32) {
    %c0_i32 = arith.constant 0 : i32
    %c0_i32_0 = arith.constant 0 : i32
    %c0_i32_1 = arith.constant 0 : i32
    return %c0_i32, %c0_i32_0 : i32, i32
  }
}

</mosaic_0001>

<bundles_post_ra>
// kernel: tpu_custom_call.1
= control target key start
LH: loop header
LB: loop body
LE: loop exit
PB: predicated region body
PF: predicated region fallthrough
CT: control target
= control target key end

     0   :  { %6 = vsyncpa [#allocation6], 0  ;;  %s641_s0 = inlined_call_operand.hbm [shape: f32[3,8,8], index: 0, kind: input, shape index: {}]   ;;  %s642_s1 = inlined_call_operand.hbm [shape: f32[1,1], index: 1, kind: output, shape index: {}]  }
   0x1   :  { %8 = vsyncpa [#allocation6 + $0x1], 0 }
   0x2   :  { %9 = vsyncpa [#allocation7], 0  ;;  %s527_s6 = smov 0   ;;  %s529_s7 = smov 0  }
   0x3   :  { %s531_s8 = smov 0   ;;  %s533_s9 = smov 0  }
   0x4   :  { %s535_s10 = smov 0   ;;  %s537_s11 = smov 0  }
   0x5 LB: > { %s321_s12 = sadd.s32 4294967295, %s509_s11   ;;  %s34_s13 = sadd.s32 1, %s505_s10  ;;  %s509_s11 = sphi %s537_s11, %s15_s11   ;;  %s505_s10 = sphi %s535_s10, %s650_s10   ;;  %s501_s9 = sphi %s533_s9, %s649_s9   ;;  %s497_s8 = sphi %s531_s8, %s648_s8   ;;  %s493_s7 = sphi %s529_s7, %s647_s7   ;;  %s489_s6 = sphi %s527_s6, %s646_s6  }
   0x6   : > { %p36_p0 = scmp.ge.s32.totalorder %s34_s13, 3  ;;  %s45_s14 = sadd.s32 1, %s497_s8 }
   0x7   : > { %p52_p1 = scmp.ne.s32.totalorder %s497_s8, %s493_s7  ;;  %p53_p2 = scmp.eq.s32.totalorder %s509_s11, 0 }
   0x8   : > { %s652_s13 = smov (%p36_p0, %s34_s13), 0  ;;  %p58_p4 = scmp.ne.s32.totalorder %s493_s7, %s489_s6 }
   0x9   : > { %p563_p3 = por %p53_p2, %p52_p1  ;;  %s38_s16 = ssub.s32 %s505_s10, %s652_s13 }
   0xa   : > { %p59_p5 = scmp.eq.s32.totalorder %s321_s12, 0  ;;  %p43_p6 = scmp.eq.s32.totalorder %s38_s16, 0 }
   0xb   : > { %p354_p8 = scmp.lt.s32.totalorder %s509_s11, 3  ;;  %s103_s19 = sand.u32 1, %s497_s8  }
   0xc   : > { %p572_p7 = por %p59_p5, %p58_p4  ;;  %s325_s20 = sshll.u32 %s505_s10, 7 }
   0xd   : > { %s578_s18 = scalar_select %p43_p6, %s497_s8, %s45_s14  }
   0xe   : > { %s324_s21 = sshll.u32 %s103_s19, 3  ;;  %s114_s24 = scalar_lea.hbm %s641_s0, %s325_s20 }
   0xf   : > { %s107_s25 = scalar_lea.vmem [#allocation5], %s324_s21  ;;  %p587_p9 = pnand %p354_p8, %p563_p3 }
  0x10   : > { %s116_s26 = sshll.u32 %s107_s25, 4  ;;  %p326_p10 = scmp.ge.s32.totalorder %s509_s11, 1  ;;  %s117_s26 = int_to_ptr.vmem [resolvable:$true] %s116_s26 }
  0x11   : > { %p121_p11 = scmp.lt.s32.totalorder %s509_s11, 4  ;;  %s104_s28 = scalar_lea.sflag [#allocation6], %s103_s19 }
  0x12   : > { %p419_p12 = pneg %p587_p9  ;;  %s430_s29 = scalar_lea.vmem %s117_s26, 128 }
  0x13   : > { %p431_p13 = scmp.ne.s32.totalorder %s117_s26, %s430_s29  ;;  %s511_s30 = smov [#allocation5]  }
  0x14   : > { %s435_s2 = sshll.u32 %s511_s30, 4  ;;  %s436_s2 = int_to_ptr.vmem [resolvable:$false] %s435_s2 }
  0x15   : > { %p433_p0 = pnand %p431_p13, %p419_p12  ;;  %s437_s3 = scalar_lea.vmem %s436_s2, 256 }
  0x16   : > { %p438_p2 = scmp.lt.s32.totalorder %s117_s26, %s436_s2  ;;  %p439_p3 = scmp.lt.s32.totalorder %s437_s3, %s430_s29 }
  0x17   : > { %p434_p1 = pneg %p433_p0 }
  0x18   : > { %p440_p4 = por %p439_p3, %p438_p2 }
  0x1a   : > { %p441_p5 = pnand %p440_p4, %p434_p1 }
  0x1c   : > { %444 = shalt.err (!%p441_p5)
}
  0x1d   : > { %353 = dma.hbm_to_vmem [thread:$0]  (!%p587_p9), %s114_s24, 128, %s117_s26, %s104_s28  }
  0x1e   : > { %p122_p6 = pnand %p326_p10, %p121_p11 }
  0x1f   : > { %s127_s4 = sand.u32 (!%p122_p6), 1, %s493_s7  }
  0x20   : > { %125 = sbr.rel (%p122_p6) target bundleno = 701 (0x2bd), region = 24  ;;  %s327_s5 = sshll.u32 (!%p122_p6), %s127_s4, 3 }
  0x21   : > { %s128_s6 = scalar_lea.sflag (!%p122_p6), [#allocation6], %s127_s4  ;;  %s131_s14 = scalar_lea.vmem (!%p122_p6), [#allocation5], %s327_s5 }
  0x25   : > { %480 = dma.done.wait (%p572_p7), %s128_s6, 128  }
  0x26   : > { %482 = vsyncadd (%p572_p7), %s128_s6, 4294967168  ;;  %vm159_vm0 = vcmask 7168   ;;  %v512_v0 = vmov -1e+30   ;;  %vm167_vm1 = vcmask 64512   ;;  %v163_v1 = vld [vmem:[%s131_s14] sm:$0xff]  ;;  %v200_v12 = vlaneseq }
  0x27   : > { %160 = vst.msk [vmem:[#allocation2] sm:$0xff] %vm159_vm0, %v512_v0  ;;  %v168_v2 = vsel %vm167_vm1, %v163_v1, -inf  ;;  %v513_v3 = vmov 0   ;;  %v514_v4 = vmov 0.0   ;;  %p145_p7 = scmp.eq.s32.totalorder %s501_s9, 0  ;;  %s515_s15 = smov 0.0  }
  0x28   : > { %169 = vmax.xlane.f32.xlu0 %v168_v2  ;;  %161 = vst.msk [vmem:[#allocation3] sm:$0xff] %vm159_vm0, %v514_v4  ;;  %162 = vst.msk [vmem:[#allocation4] sm:$0xff] %vm159_vm0, %v514_v4  ;;  %v201_v13 = vshrl.u32 %v200_v12, 7  ;;  %v205_v14 = vand.u32 127, %v200_v12  ;;  %p240_p8 = scmp.eq.s32.totalorder %s501_s9, 2  ;;  %p355_p9 = scmp.eq.s32.totalorder %s321_s12, 2 }
  0x29   : > { %410 = vset.pattern.permute.xlu0 %v513_v3  ;;  %344 = sst [smem:[#allocation8]] (%p145_p7), %s515_s15  ;;  %s516_s21 = smov [#allocation8]  }
  0x2a   : > { %vm209_vm2 = vcmp.eq.s32.totalorder %v201_v13, %v205_v14  ;;  %s226_s16 = sld [smem:[#allocation8]] }
  0x2b   : > { %v210_v16 = vsel %vm209_vm2, %v163_v1, 0.0 }
  0x2c   : > { %v211_v18 = vsel %vm167_vm1, %v210_v16, 0.0 }
  0x2e   : > { %v166_v5 = vld [vmem:[#allocation2] sm:$0xff] }
  0x2f   : > { %v175_v21 = vld [vmem:[#allocation3] sm:$0xff]  ;;  %v208_v25 = vld [vmem:[#allocation4] sm:$0xff] }
  0xb1   : > { %v170_v6 = vpop.xlane.xlu0 %169 }
  0xb2   : > { %v171_v7 = vmax.f32 %v166_v5, %v170_v6 }
  0xb4   : > { %v172_v8 = vsub.f32 %v166_v5, %v171_v7  ;;  %191 = vst.msk [vmem:[#allocation2] sm:$0xff] %vm159_vm0, %v171_v7  ;;  %179 = vperm.xlu0 %410, %v171_v7  }
  0xb6   : > { %v173_v19 = vmul.f32 1.442695, %v172_v8 }
  0xbb   : > { %v219_v31 = vld [vmem:[#allocation2] sm:$0xff] }
 0x12f   : > { %v180_v9 = vpop.permute.xlu0 %179 }
 0x130   : > { %v182_v10 = vsub.f32 %v163_v1, %v180_v9 }
 0x132   : > { %v183_v11 = vmul.f32 1.442695, %v182_v10 }
 0x134   : > { %411 = vpow2.f32 %v183_v11 }
 0x135   : > { %413 = vpow2.f32 %v173_v19 }
 0x141   : > { %v412_v15 = vpop.eup %411 }
 0x142   : > { %v185_v17 = vsel %vm167_vm1, %v412_v15, 0.0  ;;  %v414_v20 = vpop.eup %413 }
 0x143   : > { %186 = vadd.xlane.f32.xlu1 %v185_v17  ;;  %v176_v22 = vmul.f32 %v414_v20, %v175_v21 }
 0x147   : > { %212 = vadd.xlane.f32.xlu1 %v211_v18 }
 0x1cc   : > { %v187_v23 = vpop.xlane.xlu1 %186 }
 0x1cd   : > { %v188_v24 = vadd.f32 %v187_v23, %v176_v22 }
 0x1cf   : > { %190 = vst.msk [vmem:[#allocation3] sm:$0xff] %vm159_vm0, %v188_v24 }
 0x1d0   : > { %v213_v26 = vpop.xlane.xlu1 %212 }
 0x1d1   : > { %v214_v27 = vadd.f32 %v213_v26, %v208_v25 }
 0x1d3   : > { %215 = vst.msk [vmem:[#allocation4] sm:$0xff] %vm159_vm0, %v214_v27 }
 0x1d6   : > { %v220_v28 = vld [vmem:[#allocation3] sm:$0xff] }
 0x1d7   : > { %415 = vlog2.f32 %v220_v28 }
 0x1da   : > { %v224_v32 = vld [vmem:[#allocation4] sm:$0xff] }
 0x1e4   : > { %v416_v29 = vpop.eup %415 }
 0x1e5   : > { %v222_v30 = vmul.f32 0.6931472, %v416_v29 }
 0x1e7   : > { %v223_v33 = vadd.f32 %v222_v30, %v219_v31 }
 0x1e9   : > { %v225_v34 = vsub.f32 %v223_v33, %v224_v32 }
 0x1eb   : > { %v227_v35 = vsel %vm159_vm0, %v225_v34, 0.0 }
 0x1ec   : > { %228 = vadd.xlane.f32.xlu1 %v227_v35 }
 0x275   : > { %v229_v36 = vpop.xlane.xlu1 %228 }
 0x276   : > { %v230_v37 = vrot.slane %v229_v36, 4 }
 0x278   : > { %v231_v38 = vadd.f32 %v230_v37, %v229_v36 }
 0x27a   : > { %v232_v39 = vrot.slane %v231_v38, 2 }
 0x27c   : > { %v233_v40 = vadd.f32 %v232_v39, %v231_v38 }
 0x27e   : > { %v234_v41 = vrot.slane %v233_v40, 1 }
 0x280   : > { %v235_v42 = vadd.f32 %v234_v41, %v233_v40 }
 0x282   : > { %340 = vpush %v235_v42 }
 0x2b3   : > { %s341_s17 = spop %340 }
 0x2b4   : > { %s237_s19 = sadd.f32 %s341_s17, %s226_s16 }
 0x2b6   : > { %239 = sst [smem:[#allocation8]] %s237_s19  ;;  %s248_s20 = smul.f32 0.041666668, %s237_s19 }
 0x2b8   : > { %345 = sst [smem:[#allocation8]] (%p240_p8), %s248_s20 }
 0x2b9   : > { %347 = dma.smem_to_hbm (%p355_p9), %s516_s21, 16, %s642_s1, [#allocation7]  }
 0x2ba   : > { %484 = dma.done.wait (%p355_p9), [#allocation7], 16  }
 0x2bb   : > { %486 = vsyncadd (%p355_p9), [#allocation7], 4294967280 }
 0x2bc   : > { %264 = sfence }
 0x2bd PF: > { %s15_s11 = sadd.s32 1, %s509_s11   ;;  %s646_s6 = smov %s493_s7 }
 0x2be   : > { %p12_p10 = scmp.ge.s32.totalorder %s15_s11, 5   ;;  %s647_s7 = smov %s497_s8 }
 0x2bf   : > { %s648_s8 = smov %s578_s18  ;;  %s649_s9 = smov %s505_s10 }
 0x2c0   : > { %s650_s10 = smov %s652_s13  ;;  %14 = sbr.rel (!%p12_p10) target bundleno = 5 (0x5), region = 84 }
 0x2c5   :  { %270 = vsyncpa [#allocation6], 1 }
 0x2c6   :  { %272 = vsyncpa [#allocation6 + $0x1], 1 }
 0x2c7   :  { %273 = vsyncpa [#allocation7], 1 }
 0x2c8   :  { %275 = vsyncpa [#allocation7 + $0x1], 1 }

</bundles_post_ra>
